<compile_context>
chip_gen: v7x
topology: tpu7x:2x2x1
jax: 0.10.0
libtpu: 0.0.40
codegen_flags: <defaults>
</compile_context>

<pallas_src>
import jax
import jax.numpy as jnp
from jax.experimental import pallas as pl
from jax.experimental.pallas import tpu as pltpu


def _round_up(n, m):
    return ((n + m - 1) // m) * m


def classifier_kernel(x_ref, w1_ref, b1_ref, w2_ref, b2_ref, o_ref):
    out_dim = o_ref.shape[-1]                                   # real output width

    x = x_ref[...]                                              # (TB, D)

    # fc1 + ReLU (MXU matmul, f32 accumulation)
    h = jnp.dot(x, w1_ref[...], preferred_element_type=jnp.float32) + b1_ref[...]
    h = jnp.maximum(h, 0.0)

    # Dropout(p=0.1): identity at inference time (PyTorch eval semantics).
    # TODO(synk): training-mode dropout (Bernoulli mask via pltpu.prng_*) not emitted.

    # fc2 on 128-lane-padded weights (pad cols: zero weight, -1e30 bias).
    logits = jnp.dot(h.astype(w2_ref.dtype), w2_ref[...],
                     preferred_element_type=jnp.float32) + b2_ref[...]

    # Numerically stable softmax over the feature axis (dim=1).
    m = jnp.max(logits, axis=-1, keepdims=True)
    e = jnp.exp(logits - m)                                     # pad cols -> 0
    s = jnp.sum(e, axis=-1, keepdims=True)
    inv = pl.reciprocal(s, approx=True)                         # EUP seed
    inv = inv * (2.0 - s * inv)                                 # 1 Newton step -> ~f32 accurate
    probs = e * inv

    # Narrow store: only the real columns go back to HBM (masked vst on a few
    # lanes; vst slot has ample slack at this arithmetic intensity).
    o_ref[...] = probs[:, :out_dim].astype(o_ref.dtype)


def classifier_forward(x, w1, b1, w2, b2, *, tb=8192, compute_dtype=jnp.float32):
    """x: (B, D); w1: (D, H); b1: (1, H); w2: (H, out); b2: (1, out)."""
    B, D = x.shape
    H = w1.shape[1]
    out_dim = w2.shape[1]
    OUT_PAD = _round_up(max(out_dim, 1), 128)                   # lane-dense compute width

    esize = jnp.dtype(compute_dtype).itemsize

    # Optionally run the matmul inputs in bf16 (f32 accumulation is kept).
    x_c = x.astype(compute_dtype)
    w1_c = w1.astype(compute_dtype)

    # Pad fc2 weights/bias to 128 columns for in-kernel compute only:
    # zero weights + large finite negative bias => exp(pad) == 0, softmax over
    # the real columns is unchanged.  HBM output is NOT padded.
    w2p = jnp.zeros((H, OUT_PAD), compute_dtype).at[:, :out_dim].set(
        w2.astype(compute_dtype))
    b2p = jnp.full((1, OUT_PAD), -1e30, jnp.float32).at[:, :out_dim].set(
        b2.astype(jnp.float32))
    b1_f = b1.astype(jnp.float32)

    # Batch tile: multiple of 8 (sublane), large enough to amortize the
    # ~0.35 us per-grid-step overhead, but capped so the grid keeps >= ~4
    # steps (v7x megacore sharding + pipeline overlap).
    Bp8 = _round_up(B, 8)
    tb_cap = _round_up(pl.cdiv(Bp8, 4), 8)
    TB = max(8, min(int(tb), tb_cap))
    grid = (pl.cdiv(B, TB),)                                    # ragged last tile, no jnp.pad

    # VMEM budget: double-buffered x/out tiles + resident weights + the
    # compiler-materialized (TB, H) / (TB, OUT_PAD) temporaries, plus slack.
    # Never clipped below the actual need.
    bytes_weights = esize * (D * H + H * OUT_PAD) + 4 * (H + OUT_PAD)
    bytes_io = 2 * (esize * TB * D) + 2 * (4 * TB * out_dim)
    bytes_tmp = 4 * TB * (H + 3 * OUT_PAD)
    vmem_need = bytes_weights + bytes_io + bytes_tmp
    vmem_limit = int(max(vmem_need + (2 << 20), 4 << 20))

    cost = pl.CostEstimate(
        flops=2 * B * (D * H + H * OUT_PAD),
        transcendentals=B * (OUT_PAD + 1),                      # exp per logit + recip per row
        bytes_accessed=esize * (B * D + D * H + H * OUT_PAD)
        + 4 * (B * out_dim + H + OUT_PAD),
    )

    out = pl.pallas_call(
        classifier_kernel,
        out_shape=jax.ShapeDtypeStruct((B, out_dim), jnp.float32),
        grid=grid,
        in_specs=[
            pl.BlockSpec((TB, D), lambda i: (i, 0)),            # x tile (pipelined)
            pl.BlockSpec((D, H), lambda i: (0, 0)),             # w1 (VMEM-resident)
            pl.BlockSpec((1, H), lambda i: (0, 0)),             # b1
            pl.BlockSpec((H, OUT_PAD), lambda i: (0, 0)),       # w2 (compute-padded)
            pl.BlockSpec((1, OUT_PAD), lambda i: (0, 0)),       # b2 (compute-padded)
        ],
        out_specs=pl.BlockSpec((TB, out_dim), lambda i: (i, 0)),  # narrow HBM output
        compiler_params=pltpu.CompilerParams(
            dimension_semantics=("parallel",),                  # megacore-shard batch (v7x)
            vmem_limit_bytes=vmem_limit,
        ),
        cost_estimate=cost,
    )(x_c, w1_c, b1_f, w2p, b2p)

    return out


def init_params(key, input_dim, hidden_dim, output_dim):
    """Deterministic init mimicking PyTorch nn.Linear default (uniform +/- 1/sqrt(fan_in))."""
    k1, k2, k3, k4 = jax.random.split(key, 4)
    bound1 = 1.0 / jnp.sqrt(jnp.float32(input_dim))
    bound2 = 1.0 / jnp.sqrt(jnp.float32(hidden_dim))
    # Stored transposed relative to torch: (in, out)
    w1 = jax.random.uniform(k1, (input_dim, hidden_dim), jnp.float32, -bound1, bound1)
    b1 = jax.random.uniform(k2, (1, hidden_dim), jnp.float32, -bound1, bound1)
    w2 = jax.random.uniform(k3, (hidden_dim, output_dim), jnp.float32, -bound2, bound2)
    b2 = jax.random.uniform(k4, (1, output_dim), jnp.float32, -bound2, bound2)
    return w1, b1, w2, b2


def _reference(x, w1, b1, w2, b2):
    h = jnp.maximum(x @ w1 + b1, 0.0)
    return jax.nn.softmax(h @ w2 + b2, axis=1)


if __name__ == "__main__":
    input_dim = 32
    hidden_dim = 16   # fixed by the module (fc1 -> 16)
    output_dim = 4

    key = jax.random.PRNGKey(0)
    kx, kp, kx2 = jax.random.split(key, 3)
    w1, b1, w2, b2 = init_params(kp, input_dim, hidden_dim, output_dim)

    # Aligned batch.
    batch = 8
    x = jax.random.normal(kx, (batch, input_dim), dtype=jnp.float32)
    out = classifier_forward(x, w1, b1, w2, b2)
    jax.block_until_ready(out)

    ref = _reference(x, w1, b1, w2, b2)
    assert out.shape == (batch, output_dim)
    assert jnp.allclose(out, ref, atol=1e-4, rtol=1e-4)
    assert jnp.allclose(jnp.sum(out, axis=1), 1.0, atol=1e-4)

    # Ragged batch (not a multiple of the tile or of 8): exercises the masked
    # last-tile path with no wrapper-side padding copy.
    batch2 = 13
    x2 = jax.random.normal(kx2, (batch2, input_dim), dtype=jnp.float32)
    out2 = classifier_forward(x2, w1, b1, w2, b2)
    jax.block_until_ready(out2)
    ref2 = _reference(x2, w1, b1, w2, b2)
    assert out2.shape == (batch2, output_dim)
    assert jnp.allclose(out2, ref2, atol=1e-4, rtol=1e-4)
    assert jnp.allclose(jnp.sum(out2, axis=1), 1.0, atol=1e-4)

    print("KERNEL_OK")
</pallas_src>

<mosaic_0001>
module attributes {stable_mosaic.version = 11 : i64} {
  func.func @classifier_kernel(%arg0: i32, %arg1: memref<8x32xf32, #tpu.memory_space<vmem>>, %arg2: memref<32x16xf32, #tpu.memory_space<vmem>>, %arg3: memref<1x16xf32, #tpu.memory_space<vmem>>, %arg4: memref<16x128xf32, #tpu.memory_space<vmem>>, %arg5: memref<1x128xf32, #tpu.memory_space<vmem>>, %arg6: memref<8x4xf32, #tpu.memory_space<vmem>>) attributes {dimension_semantics = [#tpu.dimension_semantics<parallel>], iteration_bounds = array<i64: 1>, scalar_prefetch = 0 : i64, scratch_operands = 0 : i64, tpu.core_type = #tpu.core_type<tc>, window_params = [{transform_indices = @transform_0, window_bounds = array<i64: 8, 32>}, {pipeline_mode = #tpu.pipeline_mode<synchronous>, transform_indices = @transform_1, window_bounds = array<i64: 32, 16>}, {pipeline_mode = #tpu.pipeline_mode<synchronous>, transform_indices = @transform_2, window_bounds = array<i64: 1, 16>}, {pipeline_mode = #tpu.pipeline_mode<synchronous>, transform_indices = @transform_3, window_bounds = array<i64: 16, 128>}, {pipeline_mode = #tpu.pipeline_mode<synchronous>, transform_indices = @transform_4, window_bounds = array<i64: 1, 128>}, {transform_indices = @transform_5, window_bounds = array<i64: 8, 4>}]} {
    %c0 = arith.constant 0 : index
    %c0_0 = arith.constant 0 : index
    %0 = vector.load %arg1[%c0, %c0_0] : memref<8x32xf32, #tpu.memory_space<vmem>>, vector<8x32xf32>
    %c0_1 = arith.constant 0 : index
    %c0_2 = arith.constant 0 : index
    %1 = vector.load %arg2[%c0_1, %c0_2] : memref<32x16xf32, #tpu.memory_space<vmem>>, vector<32x16xf32>
    %cst = arith.constant dense<0.000000e+00> : vector<8x16xf32>
    %2 = tpu.matmul %0, %1, %cst {dimension_numbers = #tpu.dot_dimension_numbers<[1], [0], [0], [1], [0, 0, 1, 1], [], []>} : vector<8x32xf32>, vector<32x16xf32>, vector<8x16xf32> -> vector<8x16xf32>
    %c0_3 = arith.constant 0 : index
    %c0_4 = arith.constant 0 : index
    %3 = vector.load %arg3[%c0_3, %c0_4] : memref<1x16xf32, #tpu.memory_space<vmem>>, vector<1x16xf32>
    %4 = vector.broadcast %3 : vector<1x16xf32> to vector<8x16xf32>
    %5 = arith.addf %2, %4 : vector<8x16xf32>
    %cst_5 = arith.constant 0.000000e+00 : f32
    %6 = vector.broadcast %cst_5 : f32 to vector<8x16xf32>
    %7 = arith.maximumf %5, %6 : vector<8x16xf32>
    %c0_6 = arith.constant 0 : index
    %c0_7 = arith.constant 0 : index
    %8 = vector.load %arg4[%c0_6, %c0_7] : memref<16x128xf32, #tpu.memory_space<vmem>>, vector<16x128xf32>
    %cst_8 = arith.constant dense<0.000000e+00> : vector<8x128xf32>
    %9 = tpu.matmul %7, %8, %cst_8 {dimension_numbers = #tpu.dot_dimension_numbers<[1], [0], [0], [1], [0, 0, 1, 1], [], []>} : vector<8x16xf32>, vector<16x128xf32>, vector<8x128xf32> -> vector<8x128xf32>
    %c0_9 = arith.constant 0 : index
    %c0_10 = arith.constant 0 : index
    %10 = vector.load %arg5[%c0_9, %c0_10] : memref<1x128xf32, #tpu.memory_space<vmem>>, vector<1x128xf32>
    %11 = vector.broadcast %10 : vector<1x128xf32> to vector<8x128xf32>
    %12 = arith.addf %9, %11 : vector<8x128xf32>
    %cst_11 = arith.constant dense<0xFF800000> : vector<8xf32>
    %13 = vector.multi_reduction <maximumf>, %12, %cst_11 [1] : vector<8x128xf32> to vector<8xf32>
    %14 = vector.shape_cast %13 : vector<8xf32> to vector<8x1xf32>
    %15 = vector.broadcast %14 : vector<8x1xf32> to vector<8x128xf32>
    %16 = arith.subf %12, %15 : vector<8x128xf32>
    %17 = math.exp %16 : vector<8x128xf32>
    %cst_12 = arith.constant dense<0.000000e+00> : vector<8xf32>
    %18 = vector.multi_reduction <add>, %17, %cst_12 [1] : vector<8x128xf32> to vector<8xf32>
    %19 = vector.shape_cast %18 : vector<8xf32> to vector<8x1xf32>
    %20 = tpu.reciprocal %19 {approx = true} : vector<8x1xf32> -> vector<8x1xf32>
    %21 = arith.mulf %19, %20 : vector<8x1xf32>
    %cst_13 = arith.constant 2.000000e+00 : f32
    %22 = vector.broadcast %cst_13 : f32 to vector<8x1xf32>
    %23 = arith.subf %22, %21 : vector<8x1xf32>
    %24 = arith.mulf %20, %23 : vector<8x1xf32>
    %25 = vector.broadcast %24 : vector<8x1xf32> to vector<8x128xf32>
    %26 = arith.mulf %17, %25 : vector<8x128xf32>
    %27 = vector.extract_strided_slice %26 {offsets = [0, 0], sizes = [8, 4], strides = [1, 1]} : vector<8x128xf32> to vector<8x4xf32>
    %c0_14 = arith.constant 0 : index
    %c0_15 = arith.constant 0 : index
    %28 = vector.load %arg6[%c0_14, %c0_15] : memref<8x4xf32, #tpu.memory_space<vmem>>, vector<8x4xf32>
    tpu.vector_store %arg6[%c0_14, %c0_15], %27 {strides = array<i32>} : memref<8x4xf32, #tpu.memory_space<vmem>>, vector<8x4xf32>,
    return
  }
  func.func @transform_0(%arg0: i32) -> (i32, i32) {
    %c0_i32 = arith.constant 0 : i32
    %c0_i32_0 = arith.constant 0 : i32
    return %arg0, %c0_i32 : i32, i32
  }
  func.func @transform_1(%arg0: i32) -> (i32, i32) {
    %c0_i32 = arith.constant 0 : i32
    %c0_i32_0 = arith.constant 0 : i32
    %c0_i32_1 = arith.constant 0 : i32
    return %c0_i32, %c0_i32_0 : i32, i32
  }
  func.func @transform_2(%arg0: i32) -> (i32, i32) {
    %c0_i32 = arith.constant 0 : i32
    %c0_i32_0 = arith.constant 0 : i32
    %c0_i32_1 = arith.constant 0 : i32
    return %c0_i32, %c0_i32_0 : i32, i32
  }
  func.func @transform_3(%arg0: i32) -> (i32, i32) {
    %c0_i32 = arith.constant 0 : i32
    %c0_i32_0 = arith.constant 0 : i32
    %c0_i32_1 = arith.constant 0 : i32
    return %c0_i32, %c0_i32_0 : i32, i32
  }
  func.func @transform_4(%arg0: i32) -> (i32, i32) {
    %c0_i32 = arith.constant 0 : i32
    %c0_i32_0 = arith.constant 0 : i32
    %c0_i32_1 = arith.constant 0 : i32
    return %c0_i32, %c0_i32_0 : i32, i32
  }
  func.func @transform_5(%arg0: i32) -> (i32, i32) {
    %c0_i32 = arith.constant 0 : i32
    %c0_i32_0 = arith.constant 0 : i32
    return %arg0, %c0_i32 : i32, i32
  }
}

</mosaic_0001>

<bundles_post_ra>
// kernel: tpu_custom_call.1
= control target key start
LH: loop header
LB: loop body
LE: loop exit
PB: predicated region body
PF: predicated region fallthrough
CT: control target
= control target key end

     0   :  { %v254_v0 = vmov 0.0|0.0   ;;  %vm255_vm0 = vmmov 0   ;;  %v256_v4 = vmov 0.0   ;;  %vm32_vm1 = vcmask 261120   ;;  %s317_s1 = inlined_call_operand.vmem [shape: f32[32,16], index: 1, kind: input, shape index: {}]   ;;  %s318_s0 = inlined_call_operand.vmem [shape: f32[8,32], index: 0, kind: input, shape index: {}]   ;;  %s319_s3 = inlined_call_operand.vmem [shape: f32[16,128], index: 3, kind: input, shape index: {}]   ;;  %s320_s2 = inlined_call_operand.vmem [shape: f32[1,16], index: 2, kind: input, shape index: {}]   ;;  %s321_s4 = inlined_call_operand.vmem [shape: f32[1,128], index: 4, kind: input, shape index: {}]   ;;  %s322_s5 = inlined_call_operand.vmem [shape: f32[8,4], index: 5, kind: output, shape index: {}]  }
   0x1   :  { %238 = vmatprep.subr.bf16.mxu0 %v254_v0  ;;  %v21_v1 = vld [vmem:[%s317_s1] sm:$0xff]  ;;  %v22_v2 = vld [vmem:[%s317_s1 + $0x8] sm:$0xff]  ;;  %v23_v3 = vld [vmem:[%s317_s1 + $0x10] sm:$0xff]  ;;  %228 = vmatprep.mubr.msk.f32.mxu0 %vm255_vm0, %v256_v4  ;;  %vm116_vm2 = vcmask 130048   ;;  %vm202_vm3 = vcmask 31744  }
   0x2   :  { %v239_v5 = vpack.c.bf16 %v22_v2, %v21_v1  ;;  %v24_v6 = vld [vmem:[%s317_s1 + $0x18] sm:$0xff]  ;;  %244 = vmatprep.subr.bf16.mxu1 %v254_v0  ;;  %235 = vmatprep.mubr.msk.f32.mxu1 %vm255_vm0, %v256_v4  ;;  %v20_v8 = vld [vmem:[%s318_s0] sm:$0xff]  ;;  %v108_v10 = vld [vmem:[%s319_s3 + $0x8] sm:$0xff] }
   0x3   :  { %v242_v7 = vpack.c.bf16 %v24_v6, %v23_v3  ;;  %v107_v9 = vld [vmem:[%s319_s3] sm:$0xff] }
   0x4   :  { %240 = vmatpush3.bf16.msra.mxu0 %v239_v5  ;;  %v245_v11 = vpack.c.bf16 %v108_v10, %v107_v9  ;;  %v208_v12 = vld [vmem:[%s320_s2] ss:$0 sm:$0xff] }
   0x5   :  { %241 = vmatprep.subr.bf16.mxu0 %v254_v0  ;;  %v210_v17 = vld [vmem:[%s321_s4] ss:$0 sm:$0xff] }
   0x6   :  { %246 = vmatpush3.bf16.msra.mxu1 %v245_v11 }
   0x8   :  { %243 = vmatpush3.bf16.msra.mxu0 %v242_v7 }
   0xb   :  { %229 = vmatmul.mubr.msk.f32.vlgmr.msra.gmra.mrb[0].mxu0 %vm32_vm1, %v20_v8 }
  0xde   :  { %v102_v13 = vpop.f32.mrb[0].mxu0 }
  0xdf   :  { %v103_v14 = vadd.f32 %v208_v12, %v102_v13  ;;  %v230_v15 = vpop.f32.mrb[1].mxu0 }
  0xe1   :  { %v106_v16 = vmax.f32 %v103_v14, 0.0 }
  0xe3   :  { %236 = vmatmul.mubr.msk.f32.vlgmr.msra.gmra.mrb[0].mxu1 %vm116_vm2, %v106_v16 }
 0x1b6   :  { %v186_v18 = vpop.f32.mrb[0].mxu1 }
 0x1b7   :  { %v187_v19 = vadd.f32 %v210_v17, %v186_v18  ;;  %v237_v20 = vpop.f32.mrb[1].mxu1 }
 0x1b9   :  { %190 = vmax.xlane.f32.xlu0 %v187_v19 }
 0x246   :  { %v191_v21 = vpop.xlane.xlu0 %190 }
 0x247   :  { %v192_v22 = vsub.f32 %v187_v19, %v191_v21 }
 0x249   :  { %v193_v23 = vmul.f32 1.442695, %v192_v22 }
 0x24b   :  { %250 = vpow2.f32 %v193_v23 }
 0x255   :  { %v251_v24 = vpop.eup %250 }
 0x256   :  { %195 = vadd.xlane.f32.xlu0 %v251_v24 }
 0x2e3   :  { %v196_v25 = vpop.xlane.xlu0 %195 }
 0x2e4   :  { %252 = vrcp.f32 %v196_v25 }
 0x2ee   :  { %v253_v26 = vpop.eup %252 }
 0x2ef   :  { %v198_v27 = vmul.f32 %v253_v26, %v196_v25 }
 0x2f1   :  { %v199_v28 = vsub.f32 2.0, %v198_v27 }
 0x2f3   :  { %v200_v29 = vmul.f32 %v253_v26, %v199_v28 }
 0x2f5   :  { %v201_v30 = vmul.f32 %v251_v24, %v200_v29 }
 0x2f7   :  { %203 = vst.msk [vmem:[%s322_s5] sm:$0xff] %vm202_vm3, %v201_v30 }

</bundles_post_ra>
